<compile_context>
chip_gen: v7x
topology: tpu7x:2x2x1
jax: 0.10.0
libtpu: 0.0.40
codegen_flags: <defaults>
</compile_context>

<pallas_src>
import jax
import jax.numpy as jnp
from jax.experimental import pallas as pl
from jax.experimental.pallas import tpu as pltpu

BN_EPS = 1e-5
MXU_DTYPE = jnp.bfloat16   # MXU fast path; accumulation stays f32.


def _pick_vmem_limit_bytes():
    # ~3/4 of physical VMEM: 96 MiB on the 128 MiB parts (v5e/v6e), 48 MiB on v7x (64 MiB).
    try:
        cap = pltpu.get_tpu_info().vmem_capacity_bytes
    except Exception:
        cap = 64 * 1024 * 1024
    return int(min(cap * 3 // 4, 96 * 1024 * 1024))


def conv_block(x_nchw, weight, bias, gamma, beta):
    """ConvBlock forward. x_nchw: (N, Cin, H, W); weight: (Cout, Cin, 3, 3);
    bias/gamma/beta: (Cout,).  Returns (N, Cout, H, W) float32."""
    N, Cin, H, W = x_nchw.shape
    Cout = weight.shape[0]
    HW = H * W
    assert weight.shape == (Cout, Cin, 3, 3)

    # Flat padded-image layout: per channel, the valid H*W pixels sit at lane offset A
    # (128-aligned so the big interior store is unmasked); zeros of width >= W+1 on both
    # sides provide the vertical (top/bottom row) padding.  The 3x3 tap at (dy, dx)
    # is then the contiguous slice [A-(W+1)+dy*W+dx : +HW] of the padded vector; the
    # horizontal (left/right column) padding is enforced by two 0/1 masks.
    A = ((W + 1 + 127) // 128) * 128
    PADLEN = A + HW + W + 1

    # ----------------------------- pass 1 kernel (one image / grid step) -----------------
    def conv_bias_stats_kernel(x_ref, w_ref, b_ref, m_ref, y_ref, stats_ref, xp_ref, col_ref):
        # x_ref    : (Cin, HW)      f32   NCHW-flat image
        # w_ref    : (Cout, 9*Cin)  bf16  weights, tap-major / Cin-minor columns
        # b_ref    : (Cout, 1)      f32   conv bias
        # m_ref    : (2, HW)        bf16  [left, right] border masks
        # y_ref    : (Cout, HW)     bf16  conv+bias output (NCHW-flat, lane-dense)
        # stats_ref: (Cout, 2)      f32   per-image [sum, sum_sq] of the PRE-BIAS conv output
        # xp_ref   : VMEM (Cin, PADLEN) bf16   flat zero-padded input
        # col_ref  : VMEM (9*Cin, HW)   bf16   transposed im2col matrix

        # zero only the halo strips; the interior is fully overwritten every step.
        xp_ref[:, 0:A] = jnp.zeros((Cin, A), dtype=xp_ref.dtype)
        xp_ref[:, A + HW:PADLEN] = jnp.zeros((Cin, W + 1), dtype=xp_ref.dtype)
        xp_ref[:, A:A + HW] = x_ref[...].astype(xp_ref.dtype)

        m_left = m_ref[0:1, :]    # zero where x == 0      (left-neighbor taps)
        m_right = m_ref[1:2, :]   # zero where x == W - 1  (right-neighbor taps)

        # transposed im2col: rows [tap*Cin : (tap+1)*Cin] hold the (dy, dx)-shifted window,
        # HW on the lane axis -> dense sublane-slab stores.
        # TODO(synk): on v7x, drop col_ref and accumulate 9 small-K matmuls into an f32
        # VMEM acc instead (MRB accumulates in place); keep the fused K=9*Cin matmul here
        # since it better fills the MXU on v5e/v6e.
        for dy in range(3):
            for dx in range(3):
                tap = 3 * dy + dx
                s = A - (W + 1) + dy * W + dx
                slab = xp_ref[:, s:s + HW]                       # (Cin, HW) bf16
                if dx == 0:
                    slab = slab * m_left
                elif dx == 2:
                    slab = slab * m_right
                col_ref[tap * Cin:(tap + 1) * Cin, :] = slab

        # single MXU matmul, K = 9*Cin, bf16 inputs, f32 accumulation -> (Cout, HW).
        acc = jnp.dot(w_ref[...], col_ref[...], preferred_element_type=jnp.float32)

        # BN partial statistics on the pre-bias activation (variance is shift-invariant;
        # bias is added back to the mean in the wrapper -> less E[y^2]-E[y]^2 cancellation).
        # TODO(synk): a centered second pass (true two-pass variance) would be more robust
        # for extreme activation magnitudes.
        stats_ref[:, 0:1] = jnp.sum(acc, axis=1, keepdims=True)
        stats_ref[:, 1:2] = jnp.sum(acc * acc, axis=1, keepdims=True)

        # bf16 intermediate: halves the pass-1 writeback and the pass-2 read.
        y_ref[...] = (acc + b_ref[...]).astype(y_ref.dtype)

    # ----------------------------- pass 2 kernel ------------------------------------------
    def bn_relu_kernel(y_ref, scale_ref, shift_ref, o_ref):
        # y_ref: (Cout, HW) bf16; scale/shift: (Cout, 1) f32; o_ref: (Cout, HW) f32
        y = y_ref[...].astype(jnp.float32)
        o_ref[...] = jnp.maximum(y * scale_ref[...] + shift_ref[...], 0.0)

    # ----------------------------- wrapper-side layout glue --------------------------------
    # free metadata reshape (NCHW is already contiguous); no NHWC transpose / HBM pass.
    x_flat = x_nchw.reshape(N, Cin, HW).astype(jnp.float32)

    # (Cout, Cin, ky, kx) -> (Cout, ky, kx, Cin) -> (Cout, 9*Cin); matches col row order.
    w_mat = jnp.transpose(weight, (0, 2, 3, 1)).reshape(Cout, 9 * Cin).astype(MXU_DTYPE)
    b_col = bias.reshape(Cout, 1).astype(jnp.float32)

    xpos = jnp.arange(HW, dtype=jnp.int32) % W
    masks = jnp.stack([(xpos != 0), (xpos != (W - 1))]).astype(MXU_DTYPE)   # (2, HW)

    cparams = pltpu.CompilerParams(
        # TODO(synk): for v7x megacore, add a second "parallel" axis (H-row or Cout tiles)
        # so there are more parallel work units than the 2 TensorCores.
        dimension_semantics=("parallel",),
        vmem_limit_bytes=_pick_vmem_limit_bytes(),
    )

    cost1 = pl.CostEstimate(
        flops=2 * N * HW * 9 * Cin * Cout,
        transcendentals=0,
        bytes_accessed=(N * Cin * HW * 4 + Cout * 9 * Cin * 2 + Cout * 4 + 2 * HW * 2
                        + N * Cout * HW * 2 + N * Cout * 2 * 4),
    )

    # -------- pass 1: conv + bias, per-image BN partial stats --------
    # TODO(synk): for images too large for one VMEM tile (esp. v7x's 64 MiB), add an H-row
    # grid axis with a 1-row halo; whole-image tiles are plenty at these sizes.
    y_flat, stats = pl.pallas_call(
        conv_bias_stats_kernel,
        grid=(N,),
        in_specs=[
            pl.BlockSpec((None, Cin, HW), lambda n: (n, 0, 0)),
            pl.BlockSpec((Cout, 9 * Cin), lambda n: (0, 0)),
            pl.BlockSpec((Cout, 1), lambda n: (0, 0)),
            pl.BlockSpec((2, HW), lambda n: (0, 0)),
        ],
        out_specs=(
            pl.BlockSpec((None, Cout, HW), lambda n: (n, 0, 0)),
            pl.BlockSpec((None, Cout, 2), lambda n: (n, 0, 0)),
        ),
        out_shape=(
            jax.ShapeDtypeStruct((N, Cout, HW), MXU_DTYPE),
            jax.ShapeDtypeStruct((N, Cout, 2), jnp.float32),
        ),
        scratch_shapes=[
            pltpu.VMEM((Cin, PADLEN), MXU_DTYPE),
            pltpu.VMEM((9 * Cin, HW), MXU_DTYPE),
        ],
        compiler_params=cparams,
        cost_estimate=cost1,
    )(x_flat, w_mat, b_col, masks)

    # -------- finish batch statistics (tiny per-channel math in f32) --------
    # TODO(synk): BatchNorm2d running_mean/running_var momentum updates are a training-time
    # side effect of the PyTorch module and are not part of the returned forward value.
    count = float(N * HW)
    totals = jnp.sum(stats, axis=0)                                  # (Cout, 2)
    mean_pre = totals[:, 0] / count                                  # mean of pre-bias conv
    var = jnp.maximum(totals[:, 1] / count - mean_pre * mean_pre, 0.0)
    mean = mean_pre + bias.astype(jnp.float32)                       # bias shifts mean only
    inv_std = jax.lax.rsqrt(var + BN_EPS)
    scale_vec = gamma.astype(jnp.float32) * inv_std                  # (Cout,)
    shift_vec = beta.astype(jnp.float32) - mean * scale_vec          # (Cout,)

    cost2 = pl.CostEstimate(
        flops=3 * N * Cout * HW,
        transcendentals=0,
        bytes_accessed=N * Cout * HW * (2 + 4) + 2 * Cout * 4,
    )

    # -------- pass 2: y * scale + shift, ReLU (lane-dense mem-bound sweep) --------
    out_flat = pl.pallas_call(
        bn_relu_kernel,
        grid=(N,),
        in_specs=[
            pl.BlockSpec((None, Cout, HW), lambda n: (n, 0, 0)),
            pl.BlockSpec((Cout, 1), lambda n: (0, 0)),
            pl.BlockSpec((Cout, 1), lambda n: (0, 0)),
        ],
        out_specs=pl.BlockSpec((None, Cout, HW), lambda n: (n, 0, 0)),
        out_shape=jax.ShapeDtypeStruct((N, Cout, HW), jnp.float32),
        compiler_params=cparams,
        cost_estimate=cost2,
    )(y_flat, scale_vec.reshape(Cout, 1), shift_vec.reshape(Cout, 1))

    # (N, Cout, H*W) -> (N, Cout, H, W): pure metadata reshape, already NCHW.
    return out_flat.reshape(N, Cout, H, W)


def reference(x_nchw, weight, bias, gamma, beta):
    # pure-JAX f32 reference of the PyTorch forward (training-mode BN).
    y = jax.lax.conv_general_dilated(
        x_nchw, weight, window_strides=(1, 1), padding=((1, 1), (1, 1)),
        dimension_numbers=("NCHW", "OIHW", "NCHW"))
    y = y + bias.reshape(1, -1, 1, 1)
    mean = jnp.mean(y, axis=(0, 2, 3), keepdims=True)
    var = jnp.mean((y - mean) ** 2, axis=(0, 2, 3), keepdims=True)
    y = (y - mean) * jax.lax.rsqrt(var + BN_EPS)
    y = y * gamma.reshape(1, -1, 1, 1) + beta.reshape(1, -1, 1, 1)
    return jnp.maximum(y, 0.0)


if __name__ == "__main__":
    N, Cin, Cout, H, W = 2, 4, 8, 16, 16
    key = jax.random.PRNGKey(0)
    kx, kw, kb, kg, kbeta = jax.random.split(key, 5)

    x = jax.random.normal(kx, (N, Cin, H, W), dtype=jnp.float32)
    weight = jax.random.normal(kw, (Cout, Cin, 3, 3), dtype=jnp.float32) * 0.1
    bias = jax.random.normal(kb, (Cout,), dtype=jnp.float32) * 0.1
    gamma = 1.0 + 0.1 * jax.random.normal(kg, (Cout,), dtype=jnp.float32)
    beta = 0.1 * jax.random.normal(kbeta, (Cout,), dtype=jnp.float32)

    out = conv_block(x, weight, bias, gamma, beta)
    jax.block_until_ready(out)

    ref = reference(x, weight, bias, gamma, beta)
    assert out.shape == (N, Cout, H, W)
    # bf16 MXU inputs + bf16 inter-pass intermediate (f32 accumulation/normalization) ->
    # ~1e-3-relative deviation vs. the f32 reference; well within tolerance.
    assert jnp.max(jnp.abs(out - ref)) < 5e-2, "mismatch vs reference"

    print("KERNEL_OK")
</pallas_src>

<mosaic_0001>
module attributes {stable_mosaic.version = 11 : i64} {
  func.func @conv_bias_stats_kernel(%arg0: i32, %arg1: memref<1x4x256xf32, #tpu.memory_space<vmem>>, %arg2: memref<8x36xbf16, #tpu.memory_space<vmem>>, %arg3: memref<8x1xf32, #tpu.memory_space<vmem>>, %arg4: memref<2x256xbf16, #tpu.memory_space<vmem>>, %arg5: memref<1x8x256xbf16, #tpu.memory_space<vmem>>, %arg6: memref<1x8x2xf32, #tpu.memory_space<vmem>>, %arg7: memref<4x401xbf16, #tpu.memory_space<vmem>>, %arg8: memref<36x256xbf16, #tpu.memory_space<vmem>>) attributes {dimension_semantics = [#tpu.dimension_semantics<parallel>], iteration_bounds = array<i64: 2>, scalar_prefetch = 0 : i64, scratch_operands = 2 : i64, tpu.core_type = #tpu.core_type<tc>, window_params = [{transform_indices = @transform_0, window_bounds = array<i64: 1, 4, 256>}, {pipeline_mode = #tpu.pipeline_mode<synchronous>, transform_indices = @transform_1, window_bounds = array<i64: 8, 36>}, {pipeline_mode = #tpu.pipeline_mode<synchronous>, transform_indices = @transform_2, window_bounds = array<i64: 8, 1>}, {pipeline_mode = #tpu.pipeline_mode<synchronous>, transform_indices = @transform_3, window_bounds = array<i64: 2, 256>}, {transform_indices = @transform_4, window_bounds = array<i64: 1, 8, 256>}, {transform_indices = @transform_5, window_bounds = array<i64: 1, 8, 2>}]} {
    %cst = arith.constant 0.000000e+00 : bf16
    %0 = vector.broadcast %cst : bf16 to vector<4x128xbf16>
    %c0 = arith.constant 0 : index
    %c0_0 = arith.constant 0 : index
    %1 = vector.load %arg7[%c0, %c0_0] : memref<4x401xbf16, #tpu.memory_space<vmem>>, vector<4x128xbf16>
    tpu.vector_store %arg7[%c0, %c0_0], %0 {strides = array<i32>} : memref<4x401xbf16, #tpu.memory_space<vmem>>, vector<4x128xbf16>,
    %cst_1 = arith.constant 0.000000e+00 : bf16
    %2 = vector.broadcast %cst_1 : bf16 to vector<4x17xbf16>
    %c0_2 = arith.constant 0 : index
    %c384 = arith.constant 384 : index
    %3 = vector.load %arg7[%c0_2, %c384] : memref<4x401xbf16, #tpu.memory_space<vmem>>, vector<4x17xbf16>
    tpu.vector_store %arg7[%c0_2, %c384], %2 {strides = array<i32>} : memref<4x401xbf16, #tpu.memory_space<vmem>>, vector<4x17xbf16>,
    %c0_3 = arith.constant 0 : index
    %c0_4 = arith.constant 0 : index
    %c0_5 = arith.constant 0 : index
    %4 = vector.load %arg1[%c0_3, %c0_4, %c0_5] : memref<1x4x256xf32, #tpu.memory_space<vmem>>, vector<1x4x256xf32>
    %5 = vector.shape_cast %4 : vector<1x4x256xf32> to vector<4x256xf32>
    %6 = arith.truncf %5 : vector<4x256xf32> to vector<4x256xbf16>
    %c0_6 = arith.constant 0 : index
    %c128 = arith.constant 128 : index
    %7 = vector.load %arg7[%c0_6, %c128] : memref<4x401xbf16, #tpu.memory_space<vmem>>, vector<4x256xbf16>
    tpu.vector_store %arg7[%c0_6, %c128], %6 {strides = array<i32>} : memref<4x401xbf16, #tpu.memory_space<vmem>>, vector<4x256xbf16>,
    %c0_7 = arith.constant 0 : index
    %c0_8 = arith.constant 0 : index
    %8 = vector.load %arg4[%c0_7, %c0_8] : memref<2x256xbf16, #tpu.memory_space<vmem>>, vector<1x256xbf16>
    %c1 = arith.constant 1 : index
    %c0_9 = arith.constant 0 : index
    %9 = vector.load %arg4[%c1, %c0_9] : memref<2x256xbf16, #tpu.memory_space<vmem>>, vector<1x256xbf16>
    %c0_10 = arith.constant 0 : index
    %c111 = arith.constant 111 : index
    %10 = vector.load %arg7[%c0_10, %c111] : memref<4x401xbf16, #tpu.memory_space<vmem>>, vector<4x256xbf16>
    %11 = vector.broadcast %8 : vector<1x256xbf16> to vector<4x256xbf16>
    %12 = arith.mulf %10, %11 : vector<4x256xbf16>
    %c0_11 = arith.constant 0 : index
    %c0_12 = arith.constant 0 : index
    %13 = vector.load %arg8[%c0_11, %c0_12] : memref<36x256xbf16, #tpu.memory_space<vmem>>, vector<4x256xbf16>
    tpu.vector_store %arg8[%c0_11, %c0_12], %12 {strides = array<i32>} : memref<36x256xbf16, #tpu.memory_space<vmem>>, vector<4x256xbf16>,
    %c0_13 = arith.constant 0 : index
    %c112 = arith.constant 112 : index
    %14 = vector.load %arg7[%c0_13, %c112] : memref<4x401xbf16, #tpu.memory_space<vmem>>, vector<4x256xbf16>
    %c4 = arith.constant 4 : index
    %c0_14 = arith.constant 0 : index
    %15 = vector.load %arg8[%c4, %c0_14] : memref<36x256xbf16, #tpu.memory_space<vmem>>, vector<4x256xbf16>
    tpu.vector_store %arg8[%c4, %c0_14], %14 {strides = array<i32>} : memref<36x256xbf16, #tpu.memory_space<vmem>>, vector<4x256xbf16>,
    %c0_15 = arith.constant 0 : index
    %c113 = arith.constant 113 : index
    %16 = vector.load %arg7[%c0_15, %c113] : memref<4x401xbf16, #tpu.memory_space<vmem>>, vector<4x256xbf16>
    %17 = vector.broadcast %9 : vector<1x256xbf16> to vector<4x256xbf16>
    %18 = arith.mulf %16, %17 : vector<4x256xbf16>
    %c8 = arith.constant 8 : index
    %c0_16 = arith.constant 0 : index
    %19 = vector.load %arg8[%c8, %c0_16] : memref<36x256xbf16, #tpu.memory_space<vmem>>, vector<4x256xbf16>
    tpu.vector_store %arg8[%c8, %c0_16], %18 {strides = array<i32>} : memref<36x256xbf16, #tpu.memory_space<vmem>>, vector<4x256xbf16>,
    %c0_17 = arith.constant 0 : index
    %c127 = arith.constant 127 : index
    %20 = vector.load %arg7[%c0_17, %c127] : memref<4x401xbf16, #tpu.memory_space<vmem>>, vector<4x256xbf16>
    %21 = vector.broadcast %8 : vector<1x256xbf16> to vector<4x256xbf16>
    %22 = arith.mulf %20, %21 : vector<4x256xbf16>
    %c12 = arith.constant 12 : index
    %c0_18 = arith.constant 0 : index
    %23 = vector.load %arg8[%c12, %c0_18] : memref<36x256xbf16, #tpu.memory_space<vmem>>, vector<4x256xbf16>
    tpu.vector_store %arg8[%c12, %c0_18], %22 {strides = array<i32>} : memref<36x256xbf16, #tpu.memory_space<vmem>>, vector<4x256xbf16>,
    %c0_19 = arith.constant 0 : index
    %c128_20 = arith.constant 128 : index
    %24 = vector.load %arg7[%c0_19, %c128_20] : memref<4x401xbf16, #tpu.memory_space<vmem>>, vector<4x256xbf16>
    %c16 = arith.constant 16 : index
    %c0_21 = arith.constant 0 : index
    %25 = vector.load %arg8[%c16, %c0_21] : memref<36x256xbf16, #tpu.memory_space<vmem>>, vector<4x256xbf16>
    tpu.vector_store %arg8[%c16, %c0_21], %24 {strides = array<i32>} : memref<36x256xbf16, #tpu.memory_space<vmem>>, vector<4x256xbf16>,
    %c0_22 = arith.constant 0 : index
    %c129 = arith.constant 129 : index
    %26 = vector.load %arg7[%c0_22, %c129] : memref<4x401xbf16, #tpu.memory_space<vmem>>, vector<4x256xbf16>
    %27 = vector.broadcast %9 : vector<1x256xbf16> to vector<4x256xbf16>
    %28 = arith.mulf %26, %27 : vector<4x256xbf16>
    %c20 = arith.constant 20 : index
    %c0_23 = arith.constant 0 : index
    %29 = vector.load %arg8[%c20, %c0_23] : memref<36x256xbf16, #tpu.memory_space<vmem>>, vector<4x256xbf16>
    tpu.vector_store %arg8[%c20, %c0_23], %28 {strides = array<i32>} : memref<36x256xbf16, #tpu.memory_space<vmem>>, vector<4x256xbf16>,
    %c0_24 = arith.constant 0 : index
    %c143 = arith.constant 143 : index
    %30 = vector.load %arg7[%c0_24, %c143] : memref<4x401xbf16, #tpu.memory_space<vmem>>, vector<4x256xbf16>
    %31 = vector.broadcast %8 : vector<1x256xbf16> to vector<4x256xbf16>
    %32 = arith.mulf %30, %31 : vector<4x256xbf16>
    %c24 = arith.constant 24 : index
    %c0_25 = arith.constant 0 : index
    %33 = vector.load %arg8[%c24, %c0_25] : memref<36x256xbf16, #tpu.memory_space<vmem>>, vector<4x256xbf16>
    tpu.vector_store %arg8[%c24, %c0_25], %32 {strides = array<i32>} : memref<36x256xbf16, #tpu.memory_space<vmem>>, vector<4x256xbf16>,
    %c0_26 = arith.constant 0 : index
    %c144 = arith.constant 144 : index
    %34 = vector.load %arg7[%c0_26, %c144] : memref<4x401xbf16, #tpu.memory_space<vmem>>, vector<4x256xbf16>
    %c28 = arith.constant 28 : index
    %c0_27 = arith.constant 0 : index
    %35 = vector.load %arg8[%c28, %c0_27] : memref<36x256xbf16, #tpu.memory_space<vmem>>, vector<4x256xbf16>
    tpu.vector_store %arg8[%c28, %c0_27], %34 {strides = array<i32>} : memref<36x256xbf16, #tpu.memory_space<vmem>>, vector<4x256xbf16>,
    %c0_28 = arith.constant 0 : index
    %c145 = arith.constant 145 : index
    %36 = vector.load %arg7[%c0_28, %c145] : memref<4x401xbf16, #tpu.memory_space<vmem>>, vector<4x256xbf16>
    %37 = vector.broadcast %9 : vector<1x256xbf16> to vector<4x256xbf16>
    %38 = arith.mulf %36, %37 : vector<4x256xbf16>
    %c32 = arith.constant 32 : index
    %c0_29 = arith.constant 0 : index
    %39 = vector.load %arg8[%c32, %c0_29] : memref<36x256xbf16, #tpu.memory_space<vmem>>, vector<4x256xbf16>
    tpu.vector_store %arg8[%c32, %c0_29], %38 {strides = array<i32>} : memref<36x256xbf16, #tpu.memory_space<vmem>>, vector<4x256xbf16>,
    %c0_30 = arith.constant 0 : index
    %c0_31 = arith.constant 0 : index
    %40 = vector.load %arg2[%c0_30, %c0_31] : memref<8x36xbf16, #tpu.memory_space<vmem>>, vector<8x36xbf16>
    %c0_32 = arith.constant 0 : index
    %c0_33 = arith.constant 0 : index
    %41 = vector.load %arg8[%c0_32, %c0_33] : memref<36x256xbf16, #tpu.memory_space<vmem>>, vector<36x256xbf16>
    %cst_34 = arith.constant dense<0.000000e+00> : vector<8x256xf32>
    %42 = tpu.matmul %40, %41, %cst_34 {dimension_numbers = #tpu.dot_dimension_numbers<[1], [0], [0], [1], [0, 0, 1, 1], [], []>} : vector<8x36xbf16>, vector<36x256xbf16>, vector<8x256xf32> -> vector<8x256xf32>
    %cst_35 = arith.constant dense<0.000000e+00> : vector<8xf32>
    %43 = vector.multi_reduction <add>, %42, %cst_35 [1] : vector<8x256xf32> to vector<8xf32>
    %44 = vector.shape_cast %43 : vector<8xf32> to vector<8x1xf32>
    %c0_36 = arith.constant 0 : index
    %c0_37 = arith.constant 0 : index
    %c0_38 = arith.constant 0 : index
    %45 = vector.load %arg6[%c0_36, %c0_37, %c0_38] : memref<1x8x2xf32, #tpu.memory_space<vmem>>, vector<1x8x1xf32>
    %46 = vector.shape_cast %45 : vector<1x8x1xf32> to vector<8x1xf32>
    %47 = vector.shape_cast %44 : vector<8x1xf32> to vector<1x8x1xf32>
    tpu.vector_store %arg6[%c0_36, %c0_37, %c0_38], %47 {strides = array<i32>} : memref<1x8x2xf32, #tpu.memory_space<vmem>>, vector<1x8x1xf32>,
    %48 = arith.mulf %42, %42 : vector<8x256xf32>
    %cst_39 = arith.constant dense<0.000000e+00> : vector<8xf32>
    %49 = vector.multi_reduction <add>, %48, %cst_39 [1] : vector<8x256xf32> to vector<8xf32>
    %50 = vector.shape_cast %49 : vector<8xf32> to vector<8x1xf32>
    %c0_40 = arith.constant 0 : index
    %c0_41 = arith.constant 0 : index
    %c1_42 = arith.constant 1 : index
    %51 = vector.load %arg6[%c0_40, %c0_41, %c1_42] : memref<1x8x2xf32, #tpu.memory_space<vmem>>, vector<1x8x1xf32>
    %52 = vector.shape_cast %51 : vector<1x8x1xf32> to vector<8x1xf32>
    %53 = vector.shape_cast %50 : vector<8x1xf32> to vector<1x8x1xf32>
    tpu.vector_store %arg6[%c0_40, %c0_41, %c1_42], %53 {strides = array<i32>} : memref<1x8x2xf32, #tpu.memory_space<vmem>>, vector<1x8x1xf32>,
    %c0_43 = arith.constant 0 : index
    %c0_44 = arith.constant 0 : index
    %54 = vector.load %arg3[%c0_43, %c0_44] : memref<8x1xf32, #tpu.memory_space<vmem>>, vector<8x1xf32>
    %55 = vector.broadcast %54 : vector<8x1xf32> to vector<8x256xf32>
    %56 = arith.addf %42, %55 : vector<8x256xf32>
    %57 = arith.truncf %56 : vector<8x256xf32> to vector<8x256xbf16>
    %c0_45 = arith.constant 0 : index
    %c0_46 = arith.constant 0 : index
    %c0_47 = arith.constant 0 : index
    %58 = vector.load %arg5[%c0_45, %c0_46, %c0_47] : memref<1x8x256xbf16, #tpu.memory_space<vmem>>, vector<1x8x256xbf16>
    %59 = vector.shape_cast %58 : vector<1x8x256xbf16> to vector<8x256xbf16>
    %60 = vector.shape_cast %57 : vector<8x256xbf16> to vector<1x8x256xbf16>
    tpu.vector_store %arg5[%c0_45, %c0_46, %c0_47], %60 {strides = array<i32>} : memref<1x8x256xbf16, #tpu.memory_space<vmem>>, vector<1x8x256xbf16>,
    return
  }
  func.func @transform_0(%arg0: i32) -> (i32, i32, i32) {
    %c0_i32 = arith.constant 0 : i32
    %c0_i32_0 = arith.constant 0 : i32
    %c0_i32_1 = arith.constant 0 : i32
    return %arg0, %c0_i32, %c0_i32_0 : i32, i32, i32
  }
  func.func @transform_1(%arg0: i32) -> (i32, i32) {
    %c0_i32 = arith.constant 0 : i32
    %c0_i32_0 = arith.constant 0 : i32
    %c0_i32_1 = arith.constant 0 : i32
    return %c0_i32, %c0_i32_0 : i32, i32
  }
  func.func @transform_2(%arg0: i32) -> (i32, i32) {
    %c0_i32 = arith.constant 0 : i32
    %c0_i32_0 = arith.constant 0 : i32
    %c0_i32_1 = arith.constant 0 : i32
    return %c0_i32, %c0_i32_0 : i32, i32
  }
  func.func @transform_3(%arg0: i32) -> (i32, i32) {
    %c0_i32 = arith.constant 0 : i32
    %c0_i32_0 = arith.constant 0 : i32
    %c0_i32_1 = arith.constant 0 : i32
    return %c0_i32, %c0_i32_0 : i32, i32
  }
  func.func @transform_4(%arg0: i32) -> (i32, i32, i32) {
    %c0_i32 = arith.constant 0 : i32
    %c0_i32_0 = arith.constant 0 : i32
    %c0_i32_1 = arith.constant 0 : i32
    return %arg0, %c0_i32, %c0_i32_0 : i32, i32, i32
  }
  func.func @transform_5(%arg0: i32) -> (i32, i32, i32) {
    %c0_i32 = arith.constant 0 : i32
    %c0_i32_0 = arith.constant 0 : i32
    %c0_i32_1 = arith.constant 0 : i32
    return %arg0, %c0_i32, %c0_i32_0 : i32, i32, i32
  }
}

</mosaic_0001>

<bundles_post_ra>
// kernel: tpu_custom_call.1
= control target key start
LH: loop header
LB: loop body
LE: loop exit
PB: predicated region body
PF: predicated region fallthrough
CT: control target
= control target key end

     0   :  { %11 = vsyncpa [#allocation5], 0  ;;  %s1332_s0 = inlined_call_operand.hbm [shape: f32[2,4,256], index: 0, kind: input, shape index: {}]   ;;  %s1333_s1 = inlined_call_operand.vmem [shape: bf16[8,36], index: 1, kind: input, shape index: {}]   ;;  %s1334_s2 = inlined_call_operand.vmem [shape: f32[8,1], index: 2, kind: input, shape index: {}]   ;;  %s1335_s3 = inlined_call_operand.vmem [shape: bf16[2,256], index: 3, kind: input, shape index: {}]   ;;  %s1336_s4 = inlined_call_operand.hbm [shape: bf16[2,8,256], index: 4, kind: output, shape index: {0}]   ;;  %s1337_s5 = inlined_call_operand.vmem [shape: f32[2,8,2], index: 5, kind: output, shape index: {1}]  }
   0x1   :  { %13 = vsyncpa [#allocation5 + $0x1], 0 }
   0x2   :  { %14 = vsyncpa [#allocation6], 0 }
   0x3   :  { %16 = vsyncpa [#allocation6 + $0x1], 0  ;;  %s1087_s18 = smov 0   ;;  %s1089_s19 = smov 0  }
   0x4   :  { %s1091_s20 = smov 0   ;;  %s1093_s21 = smov 0  }
   0x5 LB: > { %s1108_s22 = sadd.s32 4294967295, %s1042_s21   ;;  %s846_s23 = sadd.s32 4294967294, %s1042_s21   ;;  %s1042_s21 = sphi %s1093_s21, %s1352_s21   ;;  %s1038_s20 = sphi %s1091_s20, %s1351_s20   ;;  %s1034_s19 = sphi %s1089_s19, %s1350_s19   ;;  %s1030_s18 = sphi %s1087_s18, %s1349_s18  }
   0x6   : > { %s1112_s24 = sadd.s32 1, %s1042_s21   ;;  %s29_s25 = sadd.s32 1, %s1038_s20 }
   0x7   : > { %s26_s26 = ssub.s32 %s1042_s21, %s1112_s24  ;;  %p36_p0 = scmp.ne.s32.totalorder %s1038_s20, %s1034_s19 }
   0x8   : > { %p27_p1 = scmp.eq.s32.totalorder %s26_s26, 0  ;;  %p37_p2 = scmp.eq.s32.totalorder %s1042_s21, 0 }
   0x9   : > { %p42_p3 = scmp.ne.s32.totalorder %s1034_s19, %s1030_s18  ;;  %p43_p4 = scmp.eq.s32.totalorder %s1108_s22, 0 }
   0xa   : > { %s1124_s27 = scalar_select %p27_p1, %s1038_s20, %s29_s25  }
   0xb   : > { %p1126_p5 = por %p37_p2, %p36_p0  ;;  %p1130_p6 = por %p43_p4, %p42_p3 }
   0xc   : > { %p129_p7 = scmp.eq.s32.totalorder %s1108_s22, 1  ;;  %p135_p8 = scmp.eq.s32.totalorder %s846_s23, 1 }
   0xd   : > { %p889_p10 = scmp.lt.s32.totalorder %s1042_s21, 2  ;;  %s190_s7 = sand.u32 1, %s1038_s20  }
   0xe   : > { %p1137_p11 = por %p129_p7, %p36_p0  ;;  %p1141_p12 = por %p135_p8, %p42_p3 }
   0xf   : > { %s874_s8 = sshll.u32 %s1042_s21, 7  ;;  %s849_s9 = sshll.u32 %s190_s7, 3 }
  0x10   : > { %s1341_s30 = scalar_select %p1137_p11, 1, 0 }
  0x11   : > { %s1342_s6 = scalar_select %p1141_p12, 1, 0 }
  0x12   : > { %s1150_s12 = scalar_lea.hbm %s1332_s0, %s874_s8  ;;  %s194_s13 = scalar_lea.vmem [#allocation4], %s849_s9 }
  0x13   : > { %s202_s14 = sshll.u32 %s194_s13, 4  ;;  %p1154_p13 = pnand %p889_p10, %p1126_p5  ;;  %s1158_s14 = int_to_ptr.vmem [resolvable:$true] %s202_s14 }
  0x14   : > { %s191_s16 = scalar_lea.sflag [#allocation5], %s190_s7  ;;  %s946_s17 = scalar_lea.hbm %s1150_s12, 128 }
  0x15   : > { %p947_p2 = scmp.ne.s32.totalorder %s1150_s12, %s946_s17  ;;  %p948_p3 = pneg %p1154_p13 }
  0x16   : > { %s951_s26 = scalar_lea.hbm %s1332_s0, 256  ;;  %p952_p5 = scmp.lt.u32.totalorder %s1150_s12, %s1332_s0 }
  0x17   : > { %p949_p4 = pnand %p948_p3, %p947_p2  ;;  %p953_p8 = scmp.lt.u32.totalorder %s951_s26, %s946_s17 }
  0x18   : > { %p955_p9 = scmp.lt.u32.totalorder %s946_s17, %s1150_s12 }
  0x19   : > { %p950_p7 = pneg %p949_p4  ;;  %p954_p10 = por %p953_p8, %p952_p5 }
  0x1b   : > { %p956_p0 = por %p955_p9, %p954_p10 }
  0x1d   : > { %p957_p1 = pnand %p956_p0, %p950_p7 }
  0x1f   : > { %960 = shalt.err (!%p957_p1)
}
  0x20   : > { %s961_s7 = scalar_lea.vmem %s1158_s14, 128  ;;  %s1044_s9 = smov [#allocation4]  }
  0x21   : > { %p962_p2 = scmp.ne.s32.totalorder %s1158_s14, %s961_s7  ;;  %s966_s10 = sshll.u32 %s1044_s9, 4  ;;  %s967_s10 = int_to_ptr.vmem [resolvable:$false] %s966_s10 }
  0x22   : > { %s968_s11 = scalar_lea.vmem %s967_s10, 256  ;;  %p969_p11 = scmp.lt.s32.totalorder %s1158_s14, %s967_s10 }
  0x23   : > { %p964_p4 = pnand %p962_p2, %p948_p3  ;;  %p970_p5 = scmp.lt.s32.totalorder %s968_s11, %s961_s7 }
  0x25   : > { %p965_p12 = pneg %p964_p4  ;;  %p971_p8 = por %p970_p5, %p969_p11 }
  0x27   : > { %p972_p9 = pnand %p971_p8, %p965_p12 }
  0x29   : > { %975 = shalt.err (!%p972_p9)
}
  0x2a   : > { %884 = dma.hbm_to_vmem [thread:$0]  (!%p1154_p13), %s1150_s12, 128, %s1158_s14, %s191_s16  }
  0x2b   : > { %p1344_p0 = scmp.lt.s32.totalorder %s1042_s21, 3  ;;  %p1345_p1 = scmp.ge.s32.totalorder %s1042_s21, 1 }
  0x2d   : > { %p208_p3 = pnand %p1345_p1, %p1344_p0 }
  0x2e   : > { %s1192_s13 = sand.u32 (!%p208_p3), 1, %s1034_s19  }
  0x2f   : > { %211 = sbr.rel (%p208_p3) target bundleno = 734 (0x2de), region = 36  ;;  %s853_s17 = sshll.u32 (!%p208_p3), %s1192_s13, 3 }
  0x30   : > { %s214_s23 = scalar_lea.sflag (!%p208_p3), [#allocation5], %s1192_s13  ;;  %s217_s15 = scalar_lea.vmem (!%p208_p3), [#allocation4], %s853_s17 }
  0x36   : > { %1021 = dma.done.wait (%p1130_p6), %s214_s23, 128  }
  0x37   : > { %1023 = vsyncadd (%p1130_p6), %s214_s23, 4294967168  ;;  %v288_v0 = vlaneseq  ;;  %v1045_v1 = vmov 1966171168   ;;  %v1046_v4 = vmov 0   ;;  %vm254_vm0 = vcmask 132096   ;;  %v256_v10 = vld [vmem:[%s217_s15] sm:$0xff] }
  0x38   : > { %v286_v2 = vunpack.c.l.s4 %v1045_v1  ;;  %253 = vst [vmem:[#allocation2] sm:$0x3] %v1046_v4  ;;  %692 = vmatprep.mubr.bf16.mxu0 %v1046_v4  ;;  %934 = vset.pattern.permute.xlu0 %v1046_v4  ;;  %255 = vst.msk [vmem:[#allocation2 + $0x6] sm:$0x3] %vm254_vm0, %v1046_v4  ;;  %v1047_v7 = vmov 1983009808   ;;  %v258_v14 = vcombine.high %v256_v10, %v256_v10 }
  0x39   : > { %v289_v3 = vshrl.u32 %v288_v0, 7  ;;  %v317_v8 = vunpack.c.l.s4 %v1047_v7  ;;  %v858_v9 = vld.sshfl [vmem:[%s1335_s3] sm:$0x11 pattern:$0x75316420]  ;;  %s1048_s29 = smov 127  }
  0x3a   : > { %v287_v5 = vunpack.c.0.s8 %v286_v2  ;;  %v284_v11 = vcombine.high %v858_v9, %v858_v9  ;;  %v856_v19 = vpack.c.bf16 %v258_v14, %v256_v10  ;;  %s1049_s16 = smov 111   ;;  %s1050_s25 = smov 113   ;;  %vm449_vm1 = vcmask 1039360  }
  0x3b   : > { %v304_v13 = vsub.s32 0, %v289_v3  ;;  %v318_v15 = vunpack.c.0.s8 %v317_v8  ;;  %s1051_s26 = smov 1   ;;  %s1052_s28 = smov 15   ;;  %vm326_vm2 = vcmask 908288   ;;  %vm476_vm3 = vcmask 7168  }
  0x3c   : > { %v290_v6 = vsub.s32 %v287_v5, %v289_v3  ;;  %857 = vst.sshfl [vmem:[#allocation2 + $0x2] sm:$0x33 pattern:$0x76325410] %v856_v19  ;;  %s1053_s8 = smov 17   ;;  %s1054_s7 = smov 16  }
  0x3d   : > { %v1205_v25 = vsub.s32 %v318_v15, %v289_v3  ;;  %s1055_s9 = smov 112   ;;  %vm414_vm4 = vcmask 924672   ;;  %vm441_vm5 = vcmask 121856   ;;  %vm352_vm6 = vcmask 1043456   ;;  %p248_p6 = scmp.lt.s32.totalorder %s1108_s22, 1 }
  0x3e   : > { %v291_v12 = vrot.slane %v858_v9, %v290_v6  ;;  %v298_v16 = vrot.slane %v284_v11, %v290_v6  ;;  %vm382_vm7 = vcmask 130048   ;;  %vm354_vm8 = vcmask 138240   ;;  %s731_s11 = scalar_lea.sflag [#allocation6], %s1192_s13  ;;  %p1346_p12 = scmp.ne.s32.totalorder %s1341_s30, 0 }
  0x3f   : > { %vm581_vm9 = vcmask 916480   ;;  %vm653_vm10 = vcmask 1041408   ;;  %vm649_vm11 = vcmask 293888   ;;  %s249_s12 = scalar_select %p248_p6, %s1108_s22, 1  ;;  %vm711_vm12 = vcmask 15368  }
  0x40   : > { %v300_v17 = vpack.i.b16 %v291_v12, %v291_v12  ;;  %v387_v18 = vshrl.u32 %v291_v12, 16  ;;  %v307_v21 = vpack.i.b16 %v298_v16, %v298_v16  ;;  %v394_v23 = vshrl.u32 %v298_v16, 16 }
  0x41   : > { %s855_s14 = sshll.u32 %s249_s12, 3 }
  0x42   : > { %v305_v20 = vrot.slane %v300_v17, %v304_v13  ;;  %v388_v22 = vpack.i.b16 %v387_v18, %v387_v18  ;;  %v312_v24 = vrot.slane %v307_v21, %v304_v13  ;;  %v395_v27 = vpack.i.b16 %v394_v23, %v394_v23 }
  0x43   : > { %v358_v33 = vld [vmem:[#allocation2] sm:$0x3f] }
  0x44   : > { %v393_v26 = vrot.slane %v388_v22, %v304_v13  ;;  %v315_v28 = vcombine.low %v305_v20, %v312_v24  ;;  %v400_v29 = vrot.slane %v395_v27, %v304_v13  ;;  %v360_v34 = vcombine.low %v358_v33, %v358_v33  ;;  %v1213_v35 = vld [vmem:[#allocation2 + $0x2] sm:$0x3f] }
  0x45   : > { %v374_v37 = vrot.slane %v358_v33, %v1205_v25  ;;  %v559_v38 = vcombine.low %v1213_v35, %v1213_v35  ;;  %v445_v42 = vld [vmem:[#allocation2] sm:$0x3f] }
  0x46   : > { %v322_v30 = vrot.slane %v315_v28, %v1205_v25  ;;  %v403_v31 = vcombine.low %v393_v26, %v400_v29  ;;  %v367_v36 = vrot.slane %v360_v34, %v1205_v25  ;;  %v275_v44 = vld [vmem:[#allocation2] sm:$0x3f]  ;;  %v573_v28 = vrot.slane %v1213_v35, %v1205_v25 }
  0x47   : > { %v566_v39 = vrot.slane %v559_v38, %v1205_v25  ;;  %v491_v57 = vld [vmem:[#allocation2 + $0x2] sm:$0x3f] }
  0x48   : > { %446 = vrot.lane.b32.xlu1 %v322_v30, %s1048_s29  ;;  %323 = vrot.lane.b32.xlu0 %v322_v30, %s1049_s16  ;;  %v410_v32 = vrot.slane %v403_v31, %v1205_v25  ;;  %v524_v61 = vld [vmem:[#allocation2 + $0x2] sm:$0x3f] }
  0x49   : > { %v386_v1 = vld [vmem:[#allocation2] sm:$0x3f] }
  0x4a   : > { %v585_v20 = vld [vmem:[#allocation2 + $0x2] sm:$0x3f] }
  0x4b   : > { %v859_v22 = vld.sshfl [vmem:[#allocation2 + $0x2] sm:$0x33 pattern:$0x76325410] }
  0x4c   : > { %411 = vrot.lane.b32.xlu0 %v410_v32, %s1050_s25  ;;  %492 = vrot.lane.b32.xlu1 %v410_v32, %s1051_s26  ;;  %490 = vst [vmem:[#allocation3 + $0x10] sm:$0x33] %v859_v22 }
  0x50   : > { %525 = vrot.lane.b32.xlu0 %v322_v30, %s1052_s28  ;;  %586 = vrot.lane.b32.xlu1 %v410_v32, %s1053_s8 }
  0x54   : > { %375 = vrot.lane.b32.xlu0 %v367_v36, %s1054_s7  ;;  %377 = vrot.lane.b32.xlu1 %v374_v37, %s1054_s7 }
  0x58   : > { %574 = vrot.lane.b32.xlu0 %v566_v39, %s1055_s9 }
  0xba   : > { %v447_v40 = vpop.permute.xlu1 %446  ;;  %v324_v41 = vpop.permute.xlu0 %323 }
  0xbb   : > { %v448_v43 = vrot.slane %v447_v40, 6  ;;  %v325_v45 = vrot.slane %v324_v41, 6 }
  0xbd   : > { %v450_v46 = vsel %vm449_vm1, %v448_v43, %v447_v40  ;;  %v327_v47 = vsel %vm326_vm2, %v325_v45, %v324_v41 }
  0xbe   : > { %v452_v48 = vmul.bf16 %v450_v46, %v445_v42  ;;  %v329_v49 = vmul.bf16 %v327_v47, %v275_v44  ;;  %v412_v50 = vpop.permute.xlu0 %411  ;;  %v493_v51 = vpop.permute.xlu1 %492 }
  0xbf   : > { %v494_v52 = vrot.slane %v493_v51, 6  ;;  %v413_v56 = vrot.slane %v412_v50, 6 }
  0xc0   : > { %v331_v53 = vcombine.high %v329_v49, %v329_v49  ;;  %v468_v54 = vrot.slane %v452_v48, %v1205_v25  ;;  %v338_v55 = vrot.slane %v329_v49, %v1205_v25  ;;  %v454_v16 = vcombine.low %v452_v48, %v452_v48 }
  0xc1   : > { %v495_v58 = vsel %vm476_vm3, %v494_v52, %v493_v51  ;;  %v415_v2 = vsel %vm414_vm4, %v413_v56, %v412_v50 }
  0xc2   : > { %v526_v59 = vpop.permute.xlu0 %525  ;;  %471 = vrot.lane.b32.xlu1 %v468_v54, %s1051_s26  ;;  %346 = vrot.lane.b32.xlu0 %v338_v55, %s1053_s8  ;;  %v587_v60 = vpop.permute.xlu1 %586  ;;  %v497_v63 = vmul.bf16 %v495_v58, %v491_v57  ;;  %v345_v0 = vrot.slane %v331_v53, %v1205_v25  ;;  %v417_v9 = vmul.bf16 %v415_v2, %v386_v1 }
  0xc3   : > { %v527_v62 = vrot.slane %v526_v59, 6  ;;  %v588_v13 = vrot.slane %v587_v60, 6  ;;  %v461_v26 = vrot.slane %v454_v16, %v1205_v25 }
  0xc4   : > { %v513_v12 = vrot.slane %v497_v63, %v1205_v25  ;;  %v419_v17 = vcombine.high %v417_v9, %v417_v9  ;;  %v426_v18 = vrot.slane %v417_v9, %v1205_v25  ;;  %v499_v23 = vcombine.low %v497_v63, %v497_v63 }
  0xc5   : > { %v528_v3 = vsel %vm441_vm5, %v527_v62, %v526_v59  ;;  %v589_v21 = vsel %vm354_vm8, %v588_v13, %v587_v60 }
  0xc6   : > { %v530_v4 = vmul.bf16 %v528_v3, %v524_v61  ;;  %348 = vrot.lane.b32.xlu1 %v345_v0, %s1053_s8  ;;  %v376_v5 = vpop.permute.xlu0 %375  ;;  %v378_v6 = vpop.permute.xlu1 %377  ;;  %v591_v24 = vmul.bf16 %v589_v21, %v585_v20  ;;  %v433_v27 = vrot.slane %v419_v17, %v1205_v25  ;;  %v506_v30 = vrot.slane %v499_v23, %v1205_v25 }
  0xc7   : > { %v379_v7 = vrot.slane %v376_v5, 4  ;;  %v380_v8 = vrot.slane %v378_v6, 4 }
  0xc8   : > { %v532_v10 = vcombine.high %v530_v4, %v530_v4  ;;  %v539_v11 = vrot.slane %v530_v4, %v1205_v25  ;;  %v593_v29 = vcombine.high %v591_v24, %v591_v24  ;;  %v600_v31 = vrot.slane %v591_v24, %v1205_v25 }
  0xc9   : > { %v381_v14 = vsel %vm352_vm6, %v379_v7, %v380_v8 }
  0xca   : > { %547 = vrot.lane.b32.xlu0 %v539_v11, %s1050_s25  ;;  %516 = vrot.lane.b32.xlu1 %v513_v12, %s1048_s29  ;;  %v383_v15 = vsel %vm382_vm7, %v376_v5, %v381_v14  ;;  %v546_v19 = vrot.slane %v532_v10, %v1205_v25  ;;  %v607_v32 = vrot.slane %v593_v29, %v1205_v25  ;;  %v575_v33 = vpop.permute.xlu0 %574 }
  0xcb   : > { %385 = vst [vmem:[#allocation3] sm:$0xcc] %v383_v15  ;;  %v578_v56 = vrot.slane %v575_v33, 4 }
  0xce   : > { %434 = vrot.lane.b32.xlu0 %v426_v18, %s1052_s28  ;;  %549 = vrot.lane.b32.xlu1 %v546_v19, %s1050_s25  ;;  %v618_v18 = vld [vmem:[%s1333_s1] sm:$0xf]  ;;  %s251_s25 = scalar_lea.vmem %s1337_s5, %s855_s14 }
  0xd2   : > { %469 = vrot.lane.b32.xlu0 %v461_v26, %s1051_s26  ;;  %436 = vrot.lane.b32.xlu1 %v433_v27, %s1052_s28  ;;  %s876_s26 = sshll.u32 %s1108_s22, 7  ;;  %s241_s28 = scalar_lea.vmem [#allocation7], %s853_s17 }
  0xd3   : > { %s749_s8 = sshll.u32 %s241_s28, 4  ;;  %s1288_s10 = scalar_lea.hbm %s1336_s4, %s876_s26  ;;  %s1290_s8 = int_to_ptr.vmem [resolvable:$true] %s749_s8 }
  0xd4   : > { %s976_s23 = scalar_lea.vmem %s1290_s8, 128  ;;  %s1056_s22 = smov [#allocation7]  }
  0xd5   : > { %p977_p11 = scmp.ne.s32.totalorder %s1290_s8, %s976_s23  ;;  %s980_s17 = sshll.u32 %s1056_s22, 4  ;;  %s981_s17 = int_to_ptr.vmem [resolvable:$false] %s980_s17 }
  0xd6   : > { %514 = vrot.lane.b32.xlu0 %v506_v30, %s1048_s29  ;;  %576 = vrot.lane.b32.xlu1 %v573_v28, %s1055_s9  ;;  %v713_v28 = vld [vmem:[%s1334_s2] sm:$0xff]  ;;  %s982_s15 = scalar_lea.vmem %s981_s17, 256  ;;  %p983_p10 = scmp.lt.s32.totalorder %s1290_s8, %s981_s17 }
  0xd7   : > { %p978_p13 = pnand %p977_p11, %p1346_p12  ;;  %p984_p2 = scmp.lt.s32.totalorder %s982_s15, %s976_s23 }
  0xd9   : > { %p979_p7 = pneg %p978_p13  ;;  %p985_p4 = por %p984_p2, %p983_p10 }
  0xda   : > { %608 = vrot.lane.b32.xlu0 %v600_v31, %s1049_s16  ;;  %610 = vrot.lane.b32.xlu1 %v607_v32, %s1049_s16 }
  0xdb   : > { %p986_p5 = pnand %p985_p4, %p979_p7 }
 0x134   : > { %v472_v34 = vpop.permute.xlu1 %471  ;;  %v347_v36 = vpop.permute.xlu0 %346 }
 0x135   : > { %v350_v35 = vrot.slane %v347_v36, 4  ;;  %v474_v50 = vrot.slane %v472_v34, 4 }
 0x138   : > { %v349_v37 = vpop.permute.xlu1 %348 }
 0x139   : > { %v351_v38 = vrot.slane %v349_v37, 4 }
 0x13b   : > { %v353_v39 = vsel %vm352_vm6, %v350_v35, %v351_v38 }
 0x13c   : > { %v355_v40 = vsel %vm354_vm8, %v347_v36, %v353_v39  ;;  %v548_v41 = vpop.permute.xlu0 %547  ;;  %v517_v42 = vpop.permute.xlu1 %516 }
 0x13d   : > { %357 = vst [vmem:[#allocation3] sm:$0x33] %v355_v40  ;;  %v551_v25 = vrot.slane %v548_v41, 4  ;;  %v519_v61 = vrot.slane %v517_v42, 4 }
 0x140   : > { %v435_v43 = vpop.permute.xlu0 %434  ;;  %v550_v44 = vpop.permute.xlu1 %549 }
 0x141   : > { %v552_v45 = vrot.slane %v550_v44, 4  ;;  %v438_v51 = vrot.slane %v435_v43, 4 }
 0x143   : > { %v553_v46 = vsel %vm352_vm6, %v551_v25, %v552_v45 }
 0x144   : > { %v554_v47 = vsel %vm414_vm4, %v548_v41, %v553_v46  ;;  %v470_v48 = vpop.permute.xlu0 %469  ;;  %v437_v49 = vpop.permute.xlu1 %436 }
 0x145   : > { %556 = vst [vmem:[#allocation3 + $0x18] sm:$0x33] %v554_v47  ;;  %v473_v52 = vrot.slane %v470_v48, 4  ;;  %v439_v53 = vrot.slane %v437_v49, 4 }
 0x147   : > { %v475_v54 = vsel %vm352_vm6, %v473_v52, %v474_v50  ;;  %v440_v55 = vsel %vm352_vm6, %v438_v51, %v439_v53 }
 0x148   : > { %v477_v57 = vsel %vm476_vm3, %v470_v48, %v475_v54  ;;  %v442_v58 = vsel %vm441_vm5, %v435_v43, %v440_v55  ;;  %v515_v59 = vpop.permute.xlu0 %514  ;;  %v577_v60 = vpop.permute.xlu1 %576 }
 0x149   : > { %479 = vst [vmem:[#allocation3 + $0x8] sm:$0xcc] %v477_v57  ;;  %444 = vst [vmem:[#allocation3 + $0x8] sm:$0x33] %v442_v58  ;;  %v518_v62 = vrot.slane %v515_v59, 4  ;;  %v579_v63 = vrot.slane %v577_v60, 4 }
 0x14b   : > { %v520_v0 = vsel %vm352_vm6, %v518_v62, %v519_v61  ;;  %v580_v1 = vsel %vm352_vm6, %v578_v56, %v579_v63 }
 0x14c   : > { %v521_v2 = vsel %vm449_vm1, %v515_v59, %v520_v0  ;;  %v582_v3 = vsel %vm581_vm9, %v575_v33, %v580_v1  ;;  %v609_v4 = vpop.permute.xlu0 %608  ;;  %v611_v5 = vpop.permute.xlu1 %610 }
 0x14d   : > { %523 = vst [vmem:[#allocation3 + $0x10] sm:$0xcc] %v521_v2  ;;  %584 = vst [vmem:[#allocation3 + $0x18] sm:$0xcc] %v582_v3  ;;  %v612_v6 = vrot.slane %v609_v4, 4  ;;  %v613_v7 = vrot.slane %v611_v5, 4 }
 0x14f   : > { %v614_v8 = vsel %vm352_vm6, %v612_v6, %v613_v7 }
 0x150   : > { %v615_v9 = vsel %vm326_vm2, %v609_v4, %v614_v8  ;;  %v938_v10 = vld [vmem:[#allocation3 + $0x4] ss:$8 sps:$4 sm:$0xff]   ;;  %v940_v11 = vld [vmem:[#allocation3] ss:$8 sps:$4 sm:$0xff]  }
 0x151   : > { %617 = vst [vmem:[#allocation3 + $0x20] sm:$0x33] %v615_v9  ;;  %660 = vmatprep.subr.bf16.mxu0 %v938_v10 }
 0x152   : > { %661 = vmatpush1.bf16.msra.mxu0 %v940_v11 }
 0x154   : > { %v941_v12 = vld [vmem:[#allocation3 + $0x14] ss:$8 sps:$4 sm:$0xff]   ;;  %v943_v13 = vld [vmem:[#allocation3 + $0x10] ss:$8 sps:$4 sm:$0xff]  }
 0x155   : > { %662 = vmatprep.subr.bf16.mxu0 %v941_v12 }
 0x156   : > { %663 = vmatpush1.bf16.msra.mxu0 %v943_v13 }
 0x158   : > { %v623_v14 = vld [vmem:[#allocation3 + $0x20] sm:$0x33] }
 0x159   : > { %v865_v15 = vcombine.high %v623_v14, %v623_v14  ;;  %v864_v16 = vcombine.low %v623_v14, %v623_v14 }
 0x15b   : > { %866 = vmatprep.subr.msk.bf16.mxu0 %vm653_vm10, %v865_v15  ;;  %v655_v17 = vsel %vm653_vm10, %v864_v16, 0 }
 0x15c   : > { %665 = vmatpush1.bf16.msra.mxu0 %v655_v17 }
 0x15f   : > { %867 = vmatmul.mubr.msk.bf16.vlgmr.msra.gmra.mrb[0].mxu0 %vm649_vm11, %v618_v18 }
 0x232   : > { %v694_v19 = vpop.f32.mrb[0].mxu0 }
 0x233   : > { %v696_v20 = vpop.f32.mrb[1].mxu0  ;;  %v706_v21 = vmul.f32 %v694_v19, %v694_v19 }
 0x234   : > { %v698_v22 = vpop.f32.mrb[2].mxu0  ;;  %v701_v23 = vadd.f32 %v696_v20, %v694_v19  ;;  %v707_v24 = vmul.f32 %v696_v20, %v696_v20 }
 0x235   : > { %v699_v26 = vpop.f32.mrb[3].mxu0 }
 0x236   : > { %702 = vadd.xlane.f32.xlu0 %v701_v23  ;;  %v708_v27 = vadd.f32 %v707_v24, %v706_v21 }
 0x238   : > { %709 = vadd.xlane.f32.xlu1 %v708_v27 }
 0x24c   : > { %716 = vperm.xlu0 %934, %v713_v28  }
 0x2c3   : > { %v703_v29 = vpop.xlane.xlu0 %702 }
 0x2c4   : > { %705 = vst.msk [vmem:[%s251_s25] sm:$0xff] %vm476_vm3, %v703_v29 }
 0x2c5   : > { %v710_v30 = vpop.xlane.xlu1 %709 }
 0x2c6   : > { %712 = vst.msk [vmem:[%s251_s25] sm:$0xff] %vm711_vm12, %v710_v30 }
 0x2cb   : > { %v717_v31 = vpop.permute.xlu0 %716 }
 0x2cc   : > { %v719_v32 = vadd.f32 %v717_v31, %v694_v19  ;;  %v720_v33 = vadd.f32 %v717_v31, %v696_v20 }
 0x2ce   : > { %v875_v34 = vpack.c.bf16 %v720_v33, %v719_v32 }
 0x2d0   : > { %729 = vst [vmem:[%s241_s28] sm:$0xff] %v875_v34 }
 0x2d1   : > { %989 = shalt.err (!%p986_p5)
}
 0x2d2   : > { %s990_s13 = scalar_lea.hbm %s1288_s10, 128  ;;  %s994_s29 = scalar_lea.hbm %s1336_s4, 256 }
 0x2d3   : > { %p991_p8 = scmp.ne.s32.totalorder %s1288_s10, %s990_s13  ;;  %p995_p1 = scmp.lt.u32.totalorder %s1288_s10, %s1336_s4 }
 0x2d4   : > { %p996_p3 = scmp.lt.u32.totalorder %s994_s29, %s990_s13  ;;  %p998_p11 = scmp.lt.u32.totalorder %s990_s13, %s1288_s10 }
 0x2d5   : > { %p992_p9 = pnand %p991_p8, %p1346_p12 }
 0x2d6   : > { %p997_p6 = por %p996_p3, %p995_p1 }
 0x2d7   : > { %p993_p0 = pneg %p992_p9 }
 0x2d8   : > { %p999_p13 = por %p998_p11, %p997_p6 }
 0x2da   : > { %p1000_p7 = pnand %p999_p13, %p993_p0 }
 0x2dc   : > { %1003 = shalt.err (!%p1000_p7)
}
 0x2dd   : > { %879 = dma.vmem_to_hbm [thread:$0]  (%p1346_p12), %s1290_s8, 128, %s1288_s10, %s731_s11  }
 0x2de PF: > { %s764_s26 = sand.u32 1, %s1030_s18   ;;  %p1347_p10 = scmp.ne.s32.totalorder %s1342_s6, 0 }
 0x2df   : > { %p1348_p2 = scmp.ge.s32.totalorder %s1042_s21, 2  ;;  %s765_s28 = scalar_lea.sflag [#allocation6], %s764_s26 }
 0x2e1   : > { %p886_p4 = pnand %p1348_p2, %p1347_p10 }
 0x2e3   : > { %1025 = dma.done.wait (!%p886_p4), %s765_s28, 128  }
 0x2e4   : > { %1027 = vsyncadd (!%p886_p4), %s765_s28, 4294967168  ;;  %p19_p5 = scmp.ge.s32.totalorder %s1112_s24, 4   ;;  %s1349_s18 = smov %s1034_s19 }
 0x2e5   : > { %s1350_s19 = smov %s1038_s20  ;;  %s1351_s20 = smov %s1124_s27 }
 0x2e6   : > { %s1352_s21 = smov %s1112_s24  ;;  %21 = sbr.rel (!%p19_p5) target bundleno = 5 (0x5), region = 93 }
 0x2ed   :  { %777 = vsyncpa [#allocation5], 1 }
 0x2ee   :  { %779 = vsyncpa [#allocation5 + $0x1], 1 }
 0x2ef   :  { %780 = vsyncpa [#allocation6], 1 }
 0x2f0   :  { %782 = vsyncpa [#allocation6 + $0x1], 1 }

</bundles_post_ra>
